<compile_context>
chip_gen: v6e
topology: v6e:2x2x1
jax: 0.10.0
libtpu: 0.0.40
codegen_flags: <defaults>
</compile_context>

<pallas_src>
import math

import jax
import jax.numpy as jnp
from jax import lax
from jax.experimental import pallas as pl
from jax.experimental.pallas import tpu as pltpu

LN_EPS = 1e-5
NEG_MASK = -1e30                      # finite sentinel (avoids NaN on all-masked rows)
VMEM_LIMIT = 32 * 1024 * 1024         # safe on every generation incl. v7x (64 MiB phys)
MXU_DTYPE = jnp.bfloat16              # MXU operand dtype (f32 accumulation everywhere)


# ----------------------------- in-kernel helpers -----------------------------

def _layernorm(x, g, b):
    mu = jnp.mean(x, axis=-1, keepdims=True)
    var = jnp.mean((x - mu) ** 2, axis=-1, keepdims=True)
    return (x - mu) * lax.rsqrt(var + LN_EPS) * g + b


def _silu(x):
    return x * jax.nn.sigmoid(x)


def _mxu(x):
    return x.astype(MXU_DTYPE)


# --------------------------------- kernels -----------------------------------

def _ffn_core(x, g, b, w1, b1, w2, b2):
    """x + 0.5 * W2(SiLU(W1(LN(x)))) on a block of rows [N, D]."""
    xn = _layernorm(x, g, b)
    h = jnp.dot(_mxu(xn), w1, preferred_element_type=jnp.float32) + b1
    h = _silu(h)
    y = jnp.dot(_mxu(h), w2, preferred_element_type=jnp.float32) + b2
    return x + 0.5 * y


def ffn_kernel(x_ref, g_ref, b_ref, w1_ref, b1_ref, w2_ref, b2_ref, o_ref):
    o_ref[...] = _ffn_core(x_ref[...], g_ref[...], b_ref[...],
                           w1_ref[...], b1_ref[...], w2_ref[...], b2_ref[...])


def ffn_final_ln_kernel(x_ref, g_ref, b_ref, w1_ref, b1_ref, w2_ref, b2_ref,
                        gf_ref, bf_ref, o_ref):
    """ffn2 residual with the block's final LayerNorm fused into the epilogue."""
    r = _ffn_core(x_ref[...], g_ref[...], b_ref[...],
                  w1_ref[...], b1_ref[...], w2_ref[...], b2_ref[...])
    o_ref[...] = _layernorm(r, gf_ref[...], bf_ref[...])


def attn_kernel(x_ref, mask_ref, g_ref, b_ref,
                wq_ref, bq_ref, wk_ref, bk_ref, wv_ref, bv_ref,
                wo_ref, bo_ref, u_ref, v_ref, p_ref, o_ref):
    """Rel-pos multi-head self-attention + residual for one batch element."""
    x = x_ref[0]                                           # [S, D] f32
    S, D = x.shape
    H = u_ref.shape[0]
    C = u_ref.shape[2]
    L = 2 * S - 1

    xn = _layernorm(x, g_ref[...], b_ref[...])
    xb = _mxu(xn)
    # full-width projections (good MXU shapes), f32 accumulation + f32 bias
    q = jnp.dot(xb, wq_ref[...], preferred_element_type=jnp.float32) + bq_ref[...]
    k = jnp.dot(xb, wk_ref[...], preferred_element_type=jnp.float32) + bk_ref[...]
    v = jnp.dot(xb, wv_ref[...], preferred_element_type=jnp.float32) + bv_ref[...]

    # split heads: [S, D] -> [H, S, C] via static lane slices + leading-dim stack
    def split_heads(t):
        return jnp.stack([t[:, h * C:(h + 1) * C] for h in range(H)], axis=0)

    qh = split_heads(q)                                    # [H, S, C] f32
    kh = split_heads(k)
    vh = split_heads(v)

    q_u = _mxu(qh + u_ref[...])                            # u/v passed as [H, 1, C]
    q_v = _mxu(qh + v_ref[...])

    # content term, all heads batched on the MXU:  [H, S, C] x [H, S, C] -> [H, S, S]
    ac = jnp.einsum('hsc,htc->hst', q_u, _mxu(kh),
                    preferred_element_type=jnp.float32)

    # position term: [H, S, C] x [H, 2S-1, C] -> [H, S, 2S-1] (batched MXU matmul)
    bd_full = jnp.einsum('hsc,hlc->hsl', q_v, p_ref[...],
                         preferred_element_type=jnp.float32)

    # relative shift: bd[h, i, j] = bd_full[h, i, (S-1-i) + j]
    # done with ceil(log2(S)) static rolls + per-row selects (no gather, no big scratch)
    row = lax.broadcasted_iota(jnp.int32, (H, S, L), 1)
    lshift = (S - 1) - row                                 # per-row left-shift amount
    y = bd_full
    step = 1
    while step < S:                                        # static Python loop
        rolled = jnp.roll(y, -step, axis=2)                # left shift by `step`
        y = jnp.where((lshift & step) != 0, rolled, y)
        step *= 2
    bd = y[:, :, :S]                                       # [H, S, S]

    scale = 1.0 / math.sqrt(C)
    scores = (ac + bd) * scale
    key_mask = mask_ref[...] > 0.5                         # [1, 1, S], True => masked
    scores = jnp.where(key_mask, NEG_MASK, scores)

    m = jnp.max(scores, axis=-1, keepdims=True)
    e = jnp.exp(scores - m)
    denom = jnp.sum(e, axis=-1, keepdims=True)
    p_attn = e * pl.reciprocal(denom, approx=True)         # EUP reciprocal

    # context per head, batched:  [H, S, S] x [H, S, C] -> [H, S, C]
    ctx = jnp.einsum('hst,htc->hsc', _mxu(p_attn), _mxu(vh),
                     preferred_element_type=jnp.float32)
    # output projection: per-head [S, C] x [C, D] batched, then summed over heads
    # (mathematically identical to concat(heads) @ Wo)
    out_h = jnp.einsum('hsc,hcd->hsd', _mxu(ctx), wo_ref[...],
                       preferred_element_type=jnp.float32)  # [H, S, D]
    attn_out = jnp.sum(out_h, axis=0) + bo_ref[...]

    o_ref[0] = x + attn_out


def conv_kernel(x_ref, mask_ref, g_ref, b_ref, w1a_ref, w1b_ref, dw_ref, w2_ref, o_ref):
    """Conformer convolution module + residual for one batch element."""
    x = x_ref[0]                                           # [T, D] f32
    T, D = x.shape
    K = dw_ref.shape[0]
    pad = (K - 1) // 2

    xn = _layernorm(x, g_ref[...], b_ref[...])
    xb = _mxu(xn)
    # GLU via two lane-aligned [D, D] matmuls (no [D, 2D] + lane slicing)
    a = jnp.dot(xb, w1a_ref[...], preferred_element_type=jnp.float32)
    gate = jnp.dot(xb, w1b_ref[...], preferred_element_type=jnp.float32)
    gated = a * jax.nn.sigmoid(gate)

    tmask = mask_ref[0] > 0.5                              # [T, 1], True => masked
    gated = jnp.where(tmask, 0.0, gated)

    # depthwise "same" conv along time: static rolls + edge masking (no padded scratch)
    t_idx = lax.broadcasted_iota(jnp.int32, (T, D), 0)
    acc = jnp.zeros((T, D), jnp.float32)
    for kk in range(K):                                    # static unroll over taps
        s = kk - pad
        shifted = gated if s == 0 else jnp.roll(gated, -s, axis=0)
        if s != 0:
            valid = jnp.logical_and(t_idx + s >= 0, t_idx + s <= T - 1)
            shifted = jnp.where(valid, shifted, 0.0)
        acc = acc + shifted * dw_ref[kk:kk + 1, :]

    h = _silu(acc)
    h = jnp.where(tmask, 0.0, h)
    y = jnp.dot(_mxu(h), w2_ref[...], preferred_element_type=jnp.float32)
    o_ref[0] = x + y


# ------------------------------- pallas wrappers ------------------------------

def _row_tile(n, max_tile=512):
    """Largest multiple-of-8 tile <= max_tile that divides n (fallback: whole n)."""
    for t in (512, 256, 128, 64, 32, 16, 8):
        if t <= max_tile and t <= n and n % t == 0:
            return t
    return n


def ffn_block(x, p, final_ln=None):
    """y = x + 0.5*FFN(LN(x)); optionally fuses the block's final LayerNorm."""
    B, T, D = x.shape
    N = B * T
    Hd = p['w1'].shape[1]
    x2 = x.reshape(N, D)
    tn = _row_tile(N)
    const = lambda i: (0, 0)

    in_specs = [
        pl.BlockSpec((tn, D), lambda i: (i, 0)),
        pl.BlockSpec((1, D), const), pl.BlockSpec((1, D), const),
        pl.BlockSpec((D, Hd), const), pl.BlockSpec((1, Hd), const),
        pl.BlockSpec((Hd, D), const), pl.BlockSpec((1, D), const),
    ]
    args = [x2, p['g'], p['b'], p['w1'], p['b1'], p['w2'], p['b2']]
    if final_ln is None:
        kernel = ffn_kernel
    else:
        kernel = ffn_final_ln_kernel
        in_specs += [pl.BlockSpec((1, D), const), pl.BlockSpec((1, D), const)]
        args += [final_ln['g'], final_ln['b']]

    out = pl.pallas_call(
        kernel,
        out_shape=jax.ShapeDtypeStruct((N, D), x.dtype),
        grid=(N // tn,),
        in_specs=in_specs,
        out_specs=pl.BlockSpec((tn, D), lambda i: (i, 0)),
        compiler_params=pltpu.CompilerParams(
            dimension_semantics=("parallel",),
            vmem_limit_bytes=VMEM_LIMIT),
    )(*args)
    return out.reshape(B, T, D)


def attn_block(x, mask_keys, p_heads, p):
    B, T, D = x.shape
    H, _, C = p['u3'].shape
    L = 2 * T - 1
    c2 = lambda b: (0, 0)
    c3 = lambda b: (0, 0, 0)
    out = pl.pallas_call(
        attn_kernel,
        out_shape=jax.ShapeDtypeStruct((B, T, D), x.dtype),
        grid=(B,),
        in_specs=[
            pl.BlockSpec((1, T, D), lambda b: (b, 0, 0)),
            pl.BlockSpec((1, 1, T), lambda b: (b, 0, 0)),
            pl.BlockSpec((1, D), c2), pl.BlockSpec((1, D), c2),
            pl.BlockSpec((D, D), c2), pl.BlockSpec((1, D), c2),
            pl.BlockSpec((D, D), c2), pl.BlockSpec((1, D), c2),
            pl.BlockSpec((D, D), c2), pl.BlockSpec((1, D), c2),
            pl.BlockSpec((H, C, D), c3), pl.BlockSpec((1, D), c2),
            pl.BlockSpec((H, 1, C), c3), pl.BlockSpec((H, 1, C), c3),
            pl.BlockSpec((H, L, C), c3),
        ],
        out_specs=pl.BlockSpec((1, T, D), lambda b: (b, 0, 0)),
        compiler_params=pltpu.CompilerParams(
            dimension_semantics=("parallel",),
            vmem_limit_bytes=VMEM_LIMIT),
    )(x, mask_keys, p['g'], p['b'],
      p['wq'], p['bq'], p['wk'], p['bk'], p['wv'], p['bv'],
      p['wo_h'], p['bo'], p['u3'], p['v3'], p_heads)
    return out


def conv_block(x, mask_time, p):
    B, T, D = x.shape
    K = p['dw'].shape[0]
    c2 = lambda b: (0, 0)
    out = pl.pallas_call(
        conv_kernel,
        out_shape=jax.ShapeDtypeStruct((B, T, D), x.dtype),
        grid=(B,),
        in_specs=[
            pl.BlockSpec((1, T, D), lambda b: (b, 0, 0)),
            pl.BlockSpec((1, T, 1), lambda b: (b, 0, 0)),
            pl.BlockSpec((1, D), c2), pl.BlockSpec((1, D), c2),
            pl.BlockSpec((D, D), c2), pl.BlockSpec((D, D), c2),
            pl.BlockSpec((K, D), c2),
            pl.BlockSpec((D, D), c2),
        ],
        out_specs=pl.BlockSpec((1, T, D), lambda b: (b, 0, 0)),
        compiler_params=pltpu.CompilerParams(
            dimension_semantics=("parallel",),
            vmem_limit_bytes=VMEM_LIMIT),
    )(x, mask_time, p['g'], p['b'], p['w1a'], p['w1b'], p['dw'], p['w2'])
    return out


# --------------------------- glue: pos-enc & params ---------------------------

def rel_pos_encoding(T, D):
    """pos_emb[k] = sinusoidal encoding of relative position (T-1-k), k=0..2T-2."""
    pos = (T - 1) - jnp.arange(2 * T - 1, dtype=jnp.float32)           # [2T-1]
    decay = jnp.exp(jnp.arange(0, D, 2, dtype=jnp.float32)
                    * -(math.log(10000.0) / D))                         # [D/2]
    ang = pos[:, None] * decay[None, :]
    pe = jnp.zeros((2 * T - 1, D), jnp.float32)
    pe = pe.at[:, 0::2].set(jnp.sin(ang))
    pe = pe.at[:, 1::2].set(jnp.cos(ang))
    return pe


def make_p_heads(pos_emb, wpos, n_heads):
    """p = linear_pos(pos_emb) laid out as [H, 2T-1, C] (bf16 MXU operand)."""
    L, D = pos_emb.shape
    C = D // n_heads
    p = pos_emb @ wpos                                                  # [2T-1, D]
    p = p.reshape(L, n_heads, C).transpose(1, 0, 2)                     # [H, 2T-1, C]
    return p.astype(MXU_DTYPE)


def init_block_params(key, D, Hd, H, K):
    C = D // H
    ks = jax.random.split(key, 16)
    w = lambda k, s: 0.05 * jax.random.normal(k, s, jnp.float32)
    wb = lambda k, s: w(k, s).astype(MXU_DTYPE)
    ones = jnp.ones((1, D), jnp.float32)
    zeros = jnp.zeros((1, D), jnp.float32)
    wo = w(ks[5], (D, D))
    w1c = w(ks[9], (D, 2 * D))            # GLU projection, split into two [D, D] halves
    return {
        'ffn1': dict(g=ones, b=zeros, w1=wb(ks[0], (D, Hd)),
                     b1=jnp.zeros((1, Hd), jnp.float32),
                     w2=wb(ks[1], (Hd, D)), b2=zeros),
        'attn': dict(g=ones, b=zeros,
                     wq=wb(ks[2], (D, D)), bq=zeros,
                     wk=wb(ks[3], (D, D)), bk=zeros,
                     wv=wb(ks[4], (D, D)), bv=zeros,
                     wo_h=wo.reshape(H, C, D).astype(MXU_DTYPE), bo=zeros,
                     wpos=w(ks[6], (D, D)),
                     u3=w(ks[7], (H, 1, C)), v3=w(ks[8], (H, 1, C))),
        'conv': dict(g=ones, b=zeros,
                     w1a=w1c[:, :D].astype(MXU_DTYPE),
                     w1b=w1c[:, D:].astype(MXU_DTYPE),
                     dw=w(ks[10], (K, D)), w2=wb(ks[11], (D, D))),
        'ffn2': dict(g=ones, b=zeros, w1=wb(ks[12], (D, Hd)),
                     b1=jnp.zeros((1, Hd), jnp.float32),
                     w2=wb(ks[13], (Hd, D)), b2=zeros),
        'final_ln': dict(g=ones, b=zeros),
    }


def conformer_block(x, mask_keys, mask_time, p_heads, params):
    x = ffn_block(x, params['ffn1'])                           # x + 0.5*ffn1(ln(x))
    x = attn_block(x, mask_keys, p_heads, params['attn'])      # x + mhsa(ln(x))
    x = conv_block(x, mask_time, params['conv'])               # x + conv(x)
    x = ffn_block(x, params['ffn2'],
                  final_ln=params['final_ln'])                 # final LN fused here
    # TODO(synk): dropout layers are identity (inference); trailing masked_fill in the
    # PyTorch code discards its result and is intentionally omitted.
    return x


def conformer_forward(x, mask, params_list, n_heads):
    B, T, D = x.shape
    pos_emb = rel_pos_encoding(T, D)
    mask_f = mask.astype(jnp.float32)
    mask_keys = mask_f.reshape(B, 1, T)      # key mask for attention scores
    mask_time = mask_f.reshape(B, T, 1)      # time mask for the conv module
    for params in params_list:
        p_heads = make_p_heads(pos_emb, params['attn']['wpos'], n_heads)
        x = conformer_block(x, mask_keys, mask_time, p_heads, params)
    return x


# ------------------------------------ main ------------------------------------

if __name__ == "__main__":
    B, T, D = 2, 8, 32
    Hd = 64          # FFN hidden
    n_heads = 4
    n_layers = 2
    K = 7            # depthwise conv kernel size
    # NOTE: production shapes should use D multiple of 128 and T >= 128 for lane-dense
    # stores / full MXU tiles; the kernels are shape-generic.

    key = jax.random.PRNGKey(0)
    kx, kp = jax.random.split(key, 2)
    x = jax.random.normal(kx, (B, T, D), jnp.float32)
    mask = jnp.zeros((B, T), dtype=bool)
    mask = mask.at[1, T - 2:].set(True)      # last two frames of batch 1 are padding

    params_list = [init_block_params(jax.random.fold_in(kp, l), D, Hd, n_heads, K)
                   for l in range(n_layers)]

    y = conformer_forward(x, mask, params_list, n_heads)
    y = jax.block_until_ready(y)
    assert y.shape == (B, T, D)
    assert bool(jnp.all(jnp.isfinite(y)))
    print("KERNEL_OK")
</pallas_src>

<mosaic_0001>
module attributes {stable_mosaic.version = 11 : i64} {
  func.func @ffn_kernel(%arg0: i32, %arg1: memref<16x32xf32, #tpu.memory_space<vmem>>, %arg2: memref<1x32xf32, #tpu.memory_space<vmem>>, %arg3: memref<1x32xf32, #tpu.memory_space<vmem>>, %arg4: memref<32x64xbf16, #tpu.memory_space<vmem>>, %arg5: memref<1x64xf32, #tpu.memory_space<vmem>>, %arg6: memref<64x32xbf16, #tpu.memory_space<vmem>>, %arg7: memref<1x32xf32, #tpu.memory_space<vmem>>, %arg8: memref<16x32xf32, #tpu.memory_space<vmem>>) attributes {dimension_semantics = [#tpu.dimension_semantics<parallel>], iteration_bounds = array<i64: 1>, scalar_prefetch = 0 : i64, scratch_operands = 0 : i64, tpu.core_type = #tpu.core_type<tc>, window_params = [{transform_indices = @transform_0, window_bounds = array<i64: 16, 32>}, {pipeline_mode = #tpu.pipeline_mode<synchronous>, transform_indices = @transform_1, window_bounds = array<i64: 1, 32>}, {pipeline_mode = #tpu.pipeline_mode<synchronous>, transform_indices = @transform_2, window_bounds = array<i64: 1, 32>}, {pipeline_mode = #tpu.pipeline_mode<synchronous>, transform_indices = @transform_3, window_bounds = array<i64: 32, 64>}, {pipeline_mode = #tpu.pipeline_mode<synchronous>, transform_indices = @transform_4, window_bounds = array<i64: 1, 64>}, {pipeline_mode = #tpu.pipeline_mode<synchronous>, transform_indices = @transform_5, window_bounds = array<i64: 64, 32>}, {pipeline_mode = #tpu.pipeline_mode<synchronous>, transform_indices = @transform_6, window_bounds = array<i64: 1, 32>}, {transform_indices = @transform_7, window_bounds = array<i64: 16, 32>}]} {
    %c0 = arith.constant 0 : index
    %c0_0 = arith.constant 0 : index
    %0 = vector.load %arg1[%c0, %c0_0] : memref<16x32xf32, #tpu.memory_space<vmem>>, vector<16x32xf32>
    %c0_1 = arith.constant 0 : index
    %c0_2 = arith.constant 0 : index
    %1 = vector.load %arg2[%c0_1, %c0_2] : memref<1x32xf32, #tpu.memory_space<vmem>>, vector<1x32xf32>
    %c0_3 = arith.constant 0 : index
    %c0_4 = arith.constant 0 : index
    %2 = vector.load %arg3[%c0_3, %c0_4] : memref<1x32xf32, #tpu.memory_space<vmem>>, vector<1x32xf32>
    %c0_5 = arith.constant 0 : index
    %c0_6 = arith.constant 0 : index
    %3 = vector.load %arg4[%c0_5, %c0_6] : memref<32x64xbf16, #tpu.memory_space<vmem>>, vector<32x64xbf16>
    %c0_7 = arith.constant 0 : index
    %c0_8 = arith.constant 0 : index
    %4 = vector.load %arg5[%c0_7, %c0_8] : memref<1x64xf32, #tpu.memory_space<vmem>>, vector<1x64xf32>
    %c0_9 = arith.constant 0 : index
    %c0_10 = arith.constant 0 : index
    %5 = vector.load %arg6[%c0_9, %c0_10] : memref<64x32xbf16, #tpu.memory_space<vmem>>, vector<64x32xbf16>
    %c0_11 = arith.constant 0 : index
    %c0_12 = arith.constant 0 : index
    %6 = vector.load %arg7[%c0_11, %c0_12] : memref<1x32xf32, #tpu.memory_space<vmem>>, vector<1x32xf32>
    %cst = arith.constant dense<0.000000e+00> : vector<16xf32>
    %7 = vector.multi_reduction <add>, %0, %cst [1] : vector<16x32xf32> to vector<16xf32>
    %8 = vector.shape_cast %7 : vector<16xf32> to vector<16x1xf32>
    %cst_13 = arith.constant 3.200000e+01 : f32
    %9 = vector.broadcast %cst_13 : f32 to vector<16x1xf32>
    %10 = arith.divf %8, %9 : vector<16x1xf32>
    %11 = vector.broadcast %10 : vector<16x1xf32> to vector<16x32xf32>
    %12 = arith.subf %0, %11 : vector<16x32xf32>
    %13 = arith.mulf %12, %12 : vector<16x32xf32>
    %cst_14 = arith.constant dense<0.000000e+00> : vector<16xf32>
    %14 = vector.multi_reduction <add>, %13, %cst_14 [1] : vector<16x32xf32> to vector<16xf32>
    %15 = vector.shape_cast %14 : vector<16xf32> to vector<16x1xf32>
    %cst_15 = arith.constant 3.200000e+01 : f32
    %16 = vector.broadcast %cst_15 : f32 to vector<16x1xf32>
    %17 = arith.divf %15, %16 : vector<16x1xf32>
    %18 = vector.broadcast %10 : vector<16x1xf32> to vector<16x32xf32>
    %19 = arith.subf %0, %18 : vector<16x32xf32>
    %cst_16 = arith.constant 9.99999974E-6 : f32
    %20 = vector.broadcast %cst_16 : f32 to vector<16x1xf32>
    %21 = arith.addf %17, %20 : vector<16x1xf32>
    %22 = math.rsqrt %21 : vector<16x1xf32>
    %23 = vector.broadcast %22 : vector<16x1xf32> to vector<16x32xf32>
    %24 = arith.mulf %19, %23 : vector<16x32xf32>
    %25 = vector.broadcast %1 : vector<1x32xf32> to vector<16x32xf32>
    %26 = arith.mulf %24, %25 : vector<16x32xf32>
    %27 = vector.broadcast %2 : vector<1x32xf32> to vector<16x32xf32>
    %28 = arith.addf %26, %27 : vector<16x32xf32>
    %29 = arith.truncf %28 : vector<16x32xf32> to vector<16x32xbf16>
    %cst_17 = arith.constant dense<0.000000e+00> : vector<16x64xf32>
    %30 = tpu.matmul %29, %3, %cst_17 {dimension_numbers = #tpu.dot_dimension_numbers<[1], [0], [0], [1], [0, 0, 1, 1], [], []>} : vector<16x32xbf16>, vector<32x64xbf16>, vector<16x64xf32> -> vector<16x64xf32>
    %31 = vector.broadcast %4 : vector<1x64xf32> to vector<16x64xf32>
    %32 = arith.addf %30, %31 : vector<16x64xf32>
    %33 = arith.negf %32 : vector<16x64xf32>
    %34 = math.exp %33 : vector<16x64xf32>
    %cst_18 = arith.constant 1.000000e+00 : f32
    %35 = vector.broadcast %cst_18 : f32 to vector<16x64xf32>
    %36 = arith.addf %35, %34 : vector<16x64xf32>
    %37 = arith.divf %35, %36 : vector<16x64xf32>
    %38 = arith.mulf %32, %37 : vector<16x64xf32>
    %39 = arith.truncf %38 : vector<16x64xf32> to vector<16x64xbf16>
    %cst_19 = arith.constant dense<0.000000e+00> : vector<16x32xf32>
    %40 = tpu.matmul %39, %5, %cst_19 {dimension_numbers = #tpu.dot_dimension_numbers<[1], [0], [0], [1], [0, 0, 1, 1], [], []>} : vector<16x64xbf16>, vector<64x32xbf16>, vector<16x32xf32> -> vector<16x32xf32>
    %41 = vector.broadcast %6 : vector<1x32xf32> to vector<16x32xf32>
    %42 = arith.addf %40, %41 : vector<16x32xf32>
    %cst_20 = arith.constant 5.000000e-01 : f32
    %43 = vector.broadcast %cst_20 : f32 to vector<16x32xf32>
    %44 = arith.mulf %43, %42 : vector<16x32xf32>
    %45 = arith.addf %0, %44 : vector<16x32xf32>
    %c0_21 = arith.constant 0 : index
    %c0_22 = arith.constant 0 : index
    %46 = vector.load %arg8[%c0_21, %c0_22] : memref<16x32xf32, #tpu.memory_space<vmem>>, vector<16x32xf32>
    tpu.vector_store %arg8[%c0_21, %c0_22], %45 {strides = array<i32>} : memref<16x32xf32, #tpu.memory_space<vmem>>, vector<16x32xf32>,
    return
  }
  func.func @transform_0(%arg0: i32) -> (i32, i32) {
    %c0_i32 = arith.constant 0 : i32
    %c0_i32_0 = arith.constant 0 : i32
    return %arg0, %c0_i32 : i32, i32
  }
  func.func @transform_1(%arg0: i32) -> (i32, i32) {
    %c0_i32 = arith.constant 0 : i32
    %c0_i32_0 = arith.constant 0 : i32
    %c0_i32_1 = arith.constant 0 : i32
    return %c0_i32, %c0_i32_0 : i32, i32
  }
  func.func @transform_2(%arg0: i32) -> (i32, i32) {
    %c0_i32 = arith.constant 0 : i32
    %c0_i32_0 = arith.constant 0 : i32
    %c0_i32_1 = arith.constant 0 : i32
    return %c0_i32, %c0_i32_0 : i32, i32
  }
  func.func @transform_3(%arg0: i32) -> (i32, i32) {
    %c0_i32 = arith.constant 0 : i32
    %c0_i32_0 = arith.constant 0 : i32
    %c0_i32_1 = arith.constant 0 : i32
    return %c0_i32, %c0_i32_0 : i32, i32
  }
  func.func @transform_4(%arg0: i32) -> (i32, i32) {
    %c0_i32 = arith.constant 0 : i32
    %c0_i32_0 = arith.constant 0 : i32
    %c0_i32_1 = arith.constant 0 : i32
    return %c0_i32, %c0_i32_0 : i32, i32
  }
  func.func @transform_5(%arg0: i32) -> (i32, i32) {
    %c0_i32 = arith.constant 0 : i32
    %c0_i32_0 = arith.constant 0 : i32
    %c0_i32_1 = arith.constant 0 : i32
    return %c0_i32, %c0_i32_0 : i32, i32
  }
  func.func @transform_6(%arg0: i32) -> (i32, i32) {
    %c0_i32 = arith.constant 0 : i32
    %c0_i32_0 = arith.constant 0 : i32
    %c0_i32_1 = arith.constant 0 : i32
    return %c0_i32, %c0_i32_0 : i32, i32
  }
  func.func @transform_7(%arg0: i32) -> (i32, i32) {
    %c0_i32 = arith.constant 0 : i32
    %c0_i32_0 = arith.constant 0 : i32
    return %arg0, %c0_i32 : i32, i32
  }
}

</mosaic_0001>

<bundles_post_ra>
// kernel: tpu_custom_call.1
= control target key start
LH: loop header
LB: loop body
LE: loop exit
PB: predicated region body
PF: predicated region fallthrough
CT: control target
= control target key end

     0   :  { %vm46_vm0 = vcmask 261120   ;;  %s453_s0 = inlined_call_operand.vmem [shape: f32[16,32], index: 0, kind: input, shape index: {}]   ;;  %s454_s1 = inlined_call_operand.vmem [shape: f32[1,32], index: 1, kind: input, shape index: {}]   ;;  %s455_s2 = inlined_call_operand.vmem [shape: f32[1,32], index: 2, kind: input, shape index: {}]   ;;  %s456_s3 = inlined_call_operand.vmem [shape: bf16[32,64], index: 3, kind: input, shape index: {}]   ;;  %s457_s4 = inlined_call_operand.vmem [shape: f32[1,64], index: 4, kind: input, shape index: {}]   ;;  %s458_s5 = inlined_call_operand.vmem [shape: bf16[64,32], index: 5, kind: input, shape index: {}]   ;;  %s459_s6 = inlined_call_operand.vmem [shape: f32[1,32], index: 6, kind: input, shape index: {}]   ;;  %s460_s7 = inlined_call_operand.hbm [shape: f32[16,32], index: 7, kind: output, shape index: {}]  }
   0x1   :  { %v400_v0 = vld [vmem:[%s453_s0] sm:$0xff]  ;;  %v405_v1 = vld [vmem:[%s453_s0 + $0x8] sm:$0xff] }
   0x2   :  { %v47_v2 = vsel %vm46_vm0, %v400_v0, 0.0  ;;  %v50_v3 = vsel %vm46_vm0, %v405_v1, 0.0 }
   0x3   :  { %48 = vadd.xlane.f32.xlu0 %v47_v2 }
   0x4   :  { %12 = vsyncpa [#allocation3], 0  ;;  %v312_v14 = vld [vmem:[%s456_s3 + $0x8] sm:$0xff]   ;;  %v352_v15 = vmov 0.0   ;;  %vm353_vm1 = vmmov 0   ;;  %v313_v16 = vld [vmem:[%s456_s3] sm:$0xff]  }
   0x5   :  { %287 = vmatprep.subr.bf16.mxu0 %v352_v15  ;;  %291 = vmatprep.mubr.msk.bf16.mxu0 %vm353_vm1, %v352_v15  ;;  %v265_v25 = vld [vmem:[%s454_s1] ss:$0 sm:$0xff]  ;;  %v314_v34 = vld [vmem:[%s458_s5 + $0x18] sm:$0xff]   ;;  %v315_v35 = vld [vmem:[%s458_s5 + $0x10] sm:$0xff]   ;;  %vm198_vm2 = vcmask 523264   ;;  %s354_s19 = smov [#allocation2]  }
   0x6   :  { %288 = vmatpush3.bf16.msra.mxu0 %v312_v14  ;;  %295 = vmatprep.subr.bf16.mxu1 %v352_v15  ;;  %v266_v29 = vld [vmem:[%s455_s2] ss:$0 sm:$0xff]  ;;  %v316_v36 = vld [vmem:[%s458_s5 + $0x8] sm:$0xff]   ;;  %s254_s20 = sshll.u32 %s354_s19, 4  ;;  %s255_s20 = int_to_ptr.vmem [resolvable:$true] %s254_s20 }
   0x7   :  { %51 = vadd.xlane.f32.xlu0 %v50_v3  ;;  %289 = vmatprep.subr.bf16.mxu0 %v352_v15  ;;  %v317_v37 = vld [vmem:[%s458_s5] sm:$0xff]   ;;  %p335_p1 = scmp.lt.s32.totalorder %s255_s20, %s255_s20 }
   0x8   :  { %303 = vmatprep.mubr.msk.bf16.mxu1 %vm353_vm1, %v352_v15  ;;  %296 = vmatpush3.bf16.msra.mxu1 %v314_v34  ;;  %v267_v38 = vld [vmem:[%s457_s4] ss:$0 sm:$0xff] }
   0x9   :  { %297 = vmatprep.subr.bf16.mxu1 %v352_v15  ;;  %v273_v56 = vld [vmem:[%s459_s6] ss:$0 sm:$0xff]  ;;  %s330_s6 = scalar_lea.vmem %s255_s20, 256 }
   0xa   :  { %290 = vmatpush3.bf16.msra.mxu0 %v313_v16  ;;  %p331_p0 = scmp.ne.s32.totalorder %s255_s20, %s330_s6  ;;  %p336_p2 = scmp.lt.s32.totalorder %s330_s6, %s330_s6 }
   0xc   :  { %298 = vmatpush3.bf16.msra.mxu1 %v315_v35  ;;  %p337_p3 = por %p336_p2, %p335_p1 }
   0xd   :  { %299 = vmatprep.subr.bf16.mxu1 %v352_v15 }
   0xe   :  { %p338_p4 = pnand %p337_p3, %p331_p0 }
  0x10   :  { %300 = vmatpush3.bf16.msra.mxu1 %v316_v36 }
  0x11   :  { %301 = vmatprep.subr.bf16.mxu1 %v352_v15 }
  0x14   :  { %302 = vmatpush3.bf16.msra.mxu1 %v317_v37 }
  0x8c   :  { %v49_v4 = vpop.xlane.xlu0 %48 }
  0x8d   :  { %v54_v5 = vmul.f32 0.03125, %v49_v4 }
  0x8f   :  { %v56_v6 = vsub.f32 %v400_v0, %v54_v5 }
  0x90   :  { %v52_v7 = vpop.xlane.xlu0 %51 }
  0x91   :  { %v55_v8 = vmul.f32 0.03125, %v52_v7  ;;  %v58_v9 = vmul.f32 %v56_v6, %v56_v6 }
  0x93   :  { %v57_v10 = vsub.f32 %v405_v1, %v55_v8  ;;  %v60_v11 = vsel %vm46_vm0, %v58_v9, 0.0 }
  0x94   :  { %61 = vadd.xlane.f32.xlu1 %v60_v11 }
  0x95   :  { %v59_v12 = vmul.f32 %v57_v10, %v57_v10 }
  0x97   :  { %v63_v13 = vsel %vm46_vm0, %v59_v12, 0.0 }
  0x98   :  { %64 = vadd.xlane.f32.xlu1 %v63_v13 }
 0x11d   :  { %v62_v17 = vpop.xlane.xlu1 %61 }
 0x11e   :  { %v66_v18 = vmul.f32 0.03125, %v62_v17 }
 0x120   :  { %v68_v19 = vadd.f32 1e-05, %v66_v18 }
 0x121   :  { %v65_v20 = vpop.xlane.xlu1 %64 }
 0x122   :  { %318 = vrsqrt.f32 %v68_v19  ;;  %v67_v21 = vmul.f32 0.03125, %v65_v20 }
 0x124   :  { %v69_v22 = vadd.f32 1e-05, %v67_v21 }
 0x126   :  { %320 = vrsqrt.f32 %v69_v22 }
 0x12f   :  { %v319_v23 = vpop.eup %318 }
 0x130   :  { %v72_v24 = vmul.f32 %v319_v23, %v56_v6 }
 0x132   :  { %v80_v28 = vmul.f32 %v265_v25, %v72_v24 }
 0x133   :  { %v321_v26 = vpop.eup %320 }
 0x134   :  { %v73_v27 = vmul.f32 %v321_v26, %v57_v10  ;;  %v88_v31 = vadd.f32 %v266_v29, %v80_v28 }
 0x136   :  { %v81_v30 = vmul.f32 %v265_v25, %v73_v27 }
 0x138   :  { %v89_v32 = vadd.f32 %v266_v29, %v81_v30 }
 0x13a   :  { %v90_v33 = vpack.c.bf16 %v89_v32, %v88_v31 }
 0x13c   :  { %292 = vmatmul.mubr.msk.bf16.vlgmr.msra.gmra.mxu0 %vm46_vm0, %v90_v33 }
 0x1fc   :  { %v146_v39 = vpop.f32.mrf.mxu0 }
 0x1fd   :  { %v147_v40 = vadd.f32 %v267_v38, %v146_v39 }
 0x1fe   :  { %v293_v41 = vpop.f32.mrf.mxu0 }
 0x1ff   :  { %v271_v42 = vmul.f32 -1.442695, %v147_v40 }
 0x200   :  { %v149_v43 = vpop.f32.mrf.mxu0 }
 0x201   :  { %322 = vpow2.f32 %v271_v42  ;;  %v150_v44 = vadd.f32 %v267_v38, %v149_v43 }
 0x202   :  { %v294_v45 = vpop.f32.mrf.mxu0 }
 0x203   :  { %v272_v46 = vmul.f32 -1.442695, %v150_v44 }
 0x205   :  { %324 = vpow2.f32 %v272_v46 }
 0x20e   :  { %v323_v47 = vpop.eup %322 }
 0x20f   :  { %v159_v48 = vadd.f32 1.0, %v323_v47 }
 0x211   :  { %326 = vrcp.f32 %v159_v48 }
 0x212   :  { %v325_v49 = vpop.eup %324 }
 0x213   :  { %v160_v50 = vadd.f32 1.0, %v325_v49 }
 0x215   :  { %328 = vrcp.f32 %v160_v50 }
 0x21e   :  { %v327_v51 = vpop.eup %326 }
 0x21f   :  { %v165_v53 = vmul.f32 %v327_v51, %v147_v40 }
 0x222   :  { %v329_v52 = vpop.eup %328 }
 0x223   :  { %v166_v54 = vmul.f32 %v329_v52, %v150_v44 }
 0x225   :  { %v167_v55 = vpack.c.bf16 %v166_v54, %v165_v53 }
 0x227   :  { %304 = vmatmul.mubr.msk.bf16.vlgmr.msra.gmra.mxu1 %vm198_vm2, %v167_v55 }
 0x2e7   :  { %v236_v57 = vpop.f32.mrf.mxu1 }
 0x2e8   :  { %v237_v58 = vadd.f32 %v273_v56, %v236_v57 }
 0x2e9   :  { %v305_v59 = vpop.f32.mrf.mxu1 }
 0x2ea   :  { %v243_v60 = vmul.f32 0.5, %v237_v58 }
 0x2eb   :  { %v239_v61 = vpop.f32.mrf.mxu1 }
 0x2ec   :  { %v245_v62 = vadd.f32 %v243_v60, %v400_v0  ;;  %v240_v63 = vadd.f32 %v273_v56, %v239_v61 }
 0x2ed   :  { %v306_v2 = vpop.f32.mrf.mxu1 }
 0x2ee   :  { %247 = vst.msk [vmem:[#allocation2] sm:$0xff] %vm46_vm0, %v245_v62  ;;  %v244_v3 = vmul.f32 0.5, %v240_v63 }
 0x2f0   :  { %v246_v4 = vadd.f32 %v244_v3, %v405_v1 }
 0x2f2   :  { %248 = vst.msk [vmem:[#allocation2 + $0x8] sm:$0xff] %vm46_vm0, %v246_v4 }
 0x2f3   :  { %341 = shalt.err (!%p338_p4)
}
 0x2f4   :  { %s355_s21 = smov 128   ;;  %s356_s22 = smov 8  }
 0x2f5   :  { %260 = dma.vmem_to_hbm [thread:$0]  %s255_s20, 256, %s460_s7, [#allocation3], %s355_s21, %s355_s21, %s356_s22  }
 0x2f6   :  { %350 = dma.done.wait [#allocation3], 256  }
 0x2f7   :  { %351 = vsyncadd [#allocation3], 4294967040 }
 0x2f8   :  { %264 = vsyncpa [#allocation3], 1 }

</bundles_post_ra>
